<compile_context>
chip_gen: v6e
topology: v6e:2x2x1
jax: 0.10.0
libtpu: 0.0.40
codegen_flags: <defaults>
</compile_context>

<pallas_src>
import jax
import jax.numpy as jnp
from jax.experimental import pallas as pl
from jax.experimental.pallas import tpu as pltpu

BETA = 1.0 / 9.0
LANES = 128            # lane width
TR_MAX_1TC = 8192      # rows/step on v5e/v6e (4 MiB f32 per input, 128 MiB VMEM)
TR_MAX_MTC = 4096      # rows/step on v7x     (2 MiB f32 per input,  64 MiB VMEM)
CH_CANDIDATES = (64, 32, 16, 8)   # rows per inner chunk (bounds vreg live range)


def _tpu_cores_per_chip():
    """Best-effort TensorCores-per-chip: 2 on v7x, 1 on v5e/v6e (safe default)."""
    try:
        dev = jax.devices()[0]
        if dev.platform != "tpu":
            return 1
        kind = (getattr(dev, "device_kind", "") or "").lower()
        if any(tag in kind for tag in ("v7", "tpu7", "7x")):
            return 2
    except Exception:
        pass
    return 1


_CORES = _tpu_cores_per_chip()
_MULTI_TC = _CORES > 1


def _make_in_spec(tr, in_map, nbuf):
    # Deeper pipelining only where it pays (v7x); fall back gracefully if the
    # running jax version does not expose pipeline_mode / Buffered.
    if nbuf > 2 and hasattr(pl, "Buffered"):
        try:
            return pl.BlockSpec((tr, LANES), in_map, pipeline_mode=pl.Buffered(nbuf))
        except TypeError:
            pass
    return pl.BlockSpec((tr, LANES), in_map)


def _make_kernel(rows, TR, CH, acc_rows, nb_per_core, needs_mask, unroll):
    n_chunks = TR // CH
    n_groups = CH // acc_rows
    inv_2beta = 0.5 / BETA
    half_beta = 0.5 * BETA

    def kernel(pred_ref, gt_ref, w_ref, sum_ref, cnt_ref):
        c = pl.program_id(0)               # core axis (CORE_PARALLEL on v7x)
        k = pl.program_id(1)               # sequential ("arbitrary") axis

        @pl.when(k == 0)
        def _():
            # Output blocks are resident across k -> they ARE the accumulators.
            sum_ref[...] = jnp.zeros_like(sum_ref)
            cnt_ref[...] = jnp.zeros_like(cnt_ref)

        # Logical (unclamped) block index; used for tail / out-of-range gating.
        blk = c * nb_per_core + k
        valid_rows = rows - blk * TR

        def fold(x):
            # (CH, LANES) -> (acc_rows, LANES): pure vreg adds, no XLU.
            if n_groups == 1:
                return x
            return x.reshape(n_groups, acc_rows, LANES).sum(axis=0)

        def make_chunk(row_base):
            def chunk(ci, carry):
                s_acc, c_acc = carry
                r0 = pl.multiple_of(ci * CH, CH)
                p = pred_ref[pl.ds(r0, CH), :].astype(jnp.float32)
                g = gt_ref[pl.ds(r0, CH), :].astype(jnp.float32)
                w = w_ref[pl.ds(r0, CH), :].astype(jnp.float32)

                # smooth L1 (Huber, beta = 1/9), same as the PyTorch reference.
                d = jnp.abs(p - g)
                loss = jnp.where(d < BETA, inv_2beta * d * d, d - half_beta) * w
                pos = jnp.where(w > 0.0, 1.0, 0.0)

                if row_base is not None:
                    # Tail block only.  OOB rows hold stale VMEM garbage (can be
                    # NaN/Inf): must SELECT zero, never multiply by a mask.
                    in_range = (row_base + r0) < valid_rows
                    loss = jnp.where(in_range, loss, 0.0)
                    pos = jnp.where(in_range, pos, 0.0)

                return s_acc + fold(loss), c_acc + fold(pos)
            return chunk

        zero = jnp.zeros((acc_rows, LANES), jnp.float32)

        def run_full():
            s_acc, c_acc = jax.lax.fori_loop(
                0, n_chunks, make_chunk(None), (zero, zero), unroll=unroll)
            sum_ref[...] += s_acc[None]
            cnt_ref[...] += c_acc[None]

        def run_tail():
            # Iota hoisted out of the chunk loop (JAX does not CSE it).
            row_base = jax.lax.broadcasted_iota(jnp.int32, (CH, LANES), 0)
            n_live = (valid_rows + CH - 1) // CH   # skip fully-dead chunks
            s_acc, c_acc = jax.lax.fori_loop(
                0, n_live, make_chunk(row_base), (zero, zero))
            sum_ref[...] += s_acc[None]
            cnt_ref[...] += c_acc[None]

        if needs_mask:
            pl.when(valid_rows >= TR)(run_full)                               # interior
            pl.when(jnp.logical_and(valid_rows > 0, valid_rows < TR))(run_tail)  # tail
            # valid_rows <= 0 (clamped duplicate block): contributes nothing.
        else:
            run_full()

    return kernel


@jax.jit
def offsets_loss(pred, gt, weights):
    assert pred.shape == gt.shape == weights.shape
    n = pred.size

    if n % LANES != 0:
        # Rare fallback: zero-pad to a lane multiple (zeros add 0 loss / 0 count).
        pad = LANES - n % LANES
        prep = lambda x: jnp.pad(x.reshape(-1), (0, pad)).reshape(-1, LANES)
    else:
        # Free reshape: no pad, no dtype cast, no extra HBM traffic.
        prep = lambda x: x.reshape(-1, LANES)

    p2, g2, w2 = prep(pred), prep(gt), prep(weights)
    rows = p2.shape[0]

    # --- Generation-aware tiling ------------------------------------------
    tr_max = TR_MAX_MTC if _MULTI_TC else TR_MAX_1TC
    TR = tr_max if rows >= tr_max else rows           # multiple of 8 or full dim
    CH = next((c for c in CH_CANDIDATES if TR % c == 0), TR)
    acc_rows = 8 if CH % 8 == 0 else CH
    n_chunks = TR // CH
    if n_chunks <= 8:
        unroll = True
    elif _MULTI_TC and n_chunks % 2 == 0:
        unroll = 2          # lets LLO overlap loads of chunk i+1 with VALU of i
    else:
        unroll = False

    ncores = _CORES
    nblocks = (rows + TR - 1) // TR
    nb_per_core = (nblocks + ncores - 1) // ncores
    needs_mask = (rows % TR != 0) or (nblocks % ncores != 0)

    def in_map(c, k):
        # Clamp so the DMA never walks past the array; fully out-of-range grid
        # steps are skipped in-kernel (valid_rows <= 0).
        return (jnp.minimum(c * nb_per_core + k, nblocks - 1), 0)

    nbuf = 3 if _MULTI_TC else 2
    in_spec = _make_in_spec(TR, in_map, nbuf)
    out_spec = pl.BlockSpec((1, acc_rows, LANES), lambda c, k: (c, 0, 0))

    if ncores > 1:
        dim_sem = (getattr(pltpu, "CORE_PARALLEL", "parallel"),
                   getattr(pltpu, "ARBITRARY", "arbitrary"))
    else:
        dim_sem = ("arbitrary", "arbitrary")

    vmem_limit = (48 if _MULTI_TC else 64) * 1024 * 1024

    psum, pcnt = pl.pallas_call(
        _make_kernel(rows, TR, CH, acc_rows, nb_per_core, needs_mask, unroll),
        out_shape=(jax.ShapeDtypeStruct((ncores, acc_rows, LANES), jnp.float32),
                   jax.ShapeDtypeStruct((ncores, acc_rows, LANES), jnp.float32)),
        grid_spec=pltpu.PrefetchScalarGridSpec(
            num_scalar_prefetch=0,
            grid=(ncores, nb_per_core),
            in_specs=[in_spec, in_spec, in_spec],
            out_specs=[out_spec, out_spec],
        ),
        compiler_params=pltpu.CompilerParams(
            dimension_semantics=dim_sem,
            vmem_limit_bytes=vmem_limit,
        ),
    )(p2, g2, w2)

    total_sum = jnp.sum(psum)
    num_pos = jnp.sum(pcnt)
    # PyTorch: if num_pos == 0 -> divide by 1.0
    return total_sum / jnp.maximum(num_pos, 1.0)


def _reference(pred, gt, weights):
    d = jnp.abs(pred - gt)
    loss = jnp.where(d < BETA, 0.5 * d * d / BETA, d - 0.5 * BETA) * weights
    num_pos = jnp.sum(weights > 0).astype(jnp.float32)
    return jnp.sum(loss) / jnp.maximum(num_pos, 1.0)


if __name__ == "__main__":
    key = jax.random.PRNGKey(0)
    k1, k2, k3 = jax.random.split(key, 3)

    # small DEKR-like offsets: (N, 2*num_joints, H, W) with N=2, 2 joints -> C=4
    shape = (2, 4, 16, 16)
    pred = jax.random.normal(k1, shape, dtype=jnp.float32)
    gt = jax.random.normal(k2, shape, dtype=jnp.float32)
    # sparse non-negative weights (most zeros, like an offset weight map)
    raw = jax.random.uniform(k3, shape, dtype=jnp.float32)
    weights = jnp.where(raw > 0.8, raw, 0.0)

    out = offsets_loss(pred, gt, weights)
    jax.block_until_ready(out)

    ref = _reference(pred, gt, weights)
    assert jnp.allclose(out, ref, rtol=1e-5, atol=1e-5), (out, ref)
    print("KERNEL_OK")
</pallas_src>

<mosaic_0001>
module attributes {stable_mosaic.version = 11 : i64} {
  func.func @kernel(%arg0: i32, %arg1: i32, %arg2: memref<16x128xf32, #tpu.memory_space<vmem>>, %arg3: memref<16x128xf32, #tpu.memory_space<vmem>>, %arg4: memref<16x128xf32, #tpu.memory_space<vmem>>, %arg5: memref<1x8x128xf32, #tpu.memory_space<vmem>>, %arg6: memref<1x8x128xf32, #tpu.memory_space<vmem>>) attributes {dimension_semantics = [#tpu.dimension_semantics<arbitrary>, #tpu.dimension_semantics<arbitrary>], iteration_bounds = array<i64: 1, 1>, scalar_prefetch = 0 : i64, scratch_operands = 0 : i64, tpu.core_type = #tpu.core_type<tc>, window_params = [{transform_indices = @transform_0, window_bounds = array<i64: 16, 128>}, {transform_indices = @transform_1, window_bounds = array<i64: 16, 128>}, {transform_indices = @transform_2, window_bounds = array<i64: 16, 128>}, {transform_indices = @transform_3, window_bounds = array<i64: 1, 8, 128>}, {transform_indices = @transform_4, window_bounds = array<i64: 1, 8, 128>}]} {
    %c0_i32 = arith.constant 0 : i32
    %0 = arith.cmpi eq, %arg1, %c0_i32 : i32
    %1 = arith.extui %0 : i1 to i32
    %c0_i32_0 = arith.constant 0 : i32
    %2 = arith.cmpi ne, %1, %c0_i32_0 : i32
    scf.if %2 {
      %cst_24 = arith.constant 0.000000e+00 : f32
      %42 = vector.broadcast %cst_24 : f32 to vector<1x8x128xf32>
      %c0_25 = arith.constant 0 : index
      %c0_26 = arith.constant 0 : index
      %c0_27 = arith.constant 0 : index
      %43 = vector.load %arg5[%c0_25, %c0_26, %c0_27] : memref<1x8x128xf32, #tpu.memory_space<vmem>>, vector<1x8x128xf32>
      tpu.vector_store %arg5[%c0_25, %c0_26, %c0_27], %42 {strides = array<i32>} : memref<1x8x128xf32, #tpu.memory_space<vmem>>, vector<1x8x128xf32>,
      %cst_28 = arith.constant 0.000000e+00 : f32
      %44 = vector.broadcast %cst_28 : f32 to vector<1x8x128xf32>
      %c0_29 = arith.constant 0 : index
      %c0_30 = arith.constant 0 : index
      %c0_31 = arith.constant 0 : index
      %45 = vector.load %arg6[%c0_29, %c0_30, %c0_31] : memref<1x8x128xf32, #tpu.memory_space<vmem>>, vector<1x8x128xf32>
      tpu.vector_store %arg6[%c0_29, %c0_30, %c0_31], %44 {strides = array<i32>} : memref<1x8x128xf32, #tpu.memory_space<vmem>>, vector<1x8x128xf32>,
    } else {
    }
    %cst = arith.constant 0.000000e+00 : f32
    %3 = vector.broadcast %cst : f32 to vector<8x128xf32>
    %c0_i32_1 = arith.constant 0 : i32
    %c16_i32 = arith.constant 16 : i32
    %4 = arith.muli %c0_i32_1, %c16_i32 : i32
    %5 = tpu.assume_multiple %4, 16 : i32
    %6 = arith.index_cast %5 : i32 to index
    %c0 = arith.constant 0 : index
    %7 = vector.load %arg2[%6, %c0] : memref<16x128xf32, #tpu.memory_space<vmem>>, vector<16x128xf32>
    %8 = arith.index_cast %5 : i32 to index
    %c0_2 = arith.constant 0 : index
    %9 = vector.load %arg3[%8, %c0_2] : memref<16x128xf32, #tpu.memory_space<vmem>>, vector<16x128xf32>
    %10 = arith.index_cast %5 : i32 to index
    %c0_3 = arith.constant 0 : index
    %11 = vector.load %arg4[%10, %c0_3] : memref<16x128xf32, #tpu.memory_space<vmem>>, vector<16x128xf32>
    %12 = arith.subf %7, %9 : vector<16x128xf32>
    %13 = math.absf %12 : vector<16x128xf32>
    %cst_4 = arith.constant 0.111111112 : f32
    %14 = vector.broadcast %cst_4 : f32 to vector<16x128xf32>
    %15 = arith.cmpf olt, %13, %14 : vector<16x128xf32>
    %cst_5 = arith.constant 4.500000e+00 : f32
    %16 = vector.broadcast %cst_5 : f32 to vector<16x128xf32>
    %17 = arith.mulf %16, %13 : vector<16x128xf32>
    %18 = arith.mulf %17, %13 : vector<16x128xf32>
    %cst_6 = arith.constant 0.055555556 : f32
    %19 = vector.broadcast %cst_6 : f32 to vector<16x128xf32>
    %20 = arith.subf %13, %19 : vector<16x128xf32>
    %21 = arith.select %15, %18, %20 : vector<16x128xi1>, vector<16x128xf32>
    %22 = arith.mulf %21, %11 : vector<16x128xf32>
    %cst_7 = arith.constant 0.000000e+00 : f32
    %23 = vector.broadcast %cst_7 : f32 to vector<16x128xf32>
    %24 = arith.cmpf ogt, %11, %23 : vector<16x128xf32>
    %cst_8 = arith.constant 1.000000e+00 : f32
    %cst_9 = arith.constant 0.000000e+00 : f32
    %25 = vector.broadcast %cst_8 : f32 to vector<16x128xf32>
    %26 = vector.broadcast %cst_9 : f32 to vector<16x128xf32>
    %27 = arith.select %24, %25, %26 : vector<16x128xi1>, vector<16x128xf32>
    %28 = vector.shape_cast %22 : vector<16x128xf32> to vector<2x8x128xf32>
    %cst_10 = arith.constant dense<0.000000e+00> : vector<8x128xf32>
    %29 = vector.multi_reduction <add>, %28, %cst_10 [0] : vector<2x8x128xf32> to vector<8x128xf32>
    %30 = arith.addf %3, %29 : vector<8x128xf32>
    %31 = vector.shape_cast %27 : vector<16x128xf32> to vector<2x8x128xf32>
    %cst_11 = arith.constant dense<0.000000e+00> : vector<8x128xf32>
    %32 = vector.multi_reduction <add>, %31, %cst_11 [0] : vector<2x8x128xf32> to vector<8x128xf32>
    %33 = arith.addf %3, %32 : vector<8x128xf32>
    %c1_i32 = arith.constant 1 : i32
    %c0_12 = arith.constant 0 : index
    %c0_13 = arith.constant 0 : index
    %c0_14 = arith.constant 0 : index
    %34 = vector.load %arg5[%c0_12, %c0_13, %c0_14] : memref<1x8x128xf32, #tpu.memory_space<vmem>>, vector<1x8x128xf32>
    %35 = vector.shape_cast %30 : vector<8x128xf32> to vector<1x8x128xf32>
    %36 = arith.addf %34, %35 : vector<1x8x128xf32>
    %c0_15 = arith.constant 0 : index
    %c0_16 = arith.constant 0 : index
    %c0_17 = arith.constant 0 : index
    %37 = vector.load %arg5[%c0_15, %c0_16, %c0_17] : memref<1x8x128xf32, #tpu.memory_space<vmem>>, vector<1x8x128xf32>
    tpu.vector_store %arg5[%c0_15, %c0_16, %c0_17], %36 {strides = array<i32>} : memref<1x8x128xf32, #tpu.memory_space<vmem>>, vector<1x8x128xf32>,
    %c0_18 = arith.constant 0 : index
    %c0_19 = arith.constant 0 : index
    %c0_20 = arith.constant 0 : index
    %38 = vector.load %arg6[%c0_18, %c0_19, %c0_20] : memref<1x8x128xf32, #tpu.memory_space<vmem>>, vector<1x8x128xf32>
    %39 = vector.shape_cast %33 : vector<8x128xf32> to vector<1x8x128xf32>
    %40 = arith.addf %38, %39 : vector<1x8x128xf32>
    %c0_21 = arith.constant 0 : index
    %c0_22 = arith.constant 0 : index
    %c0_23 = arith.constant 0 : index
    %41 = vector.load %arg6[%c0_21, %c0_22, %c0_23] : memref<1x8x128xf32, #tpu.memory_space<vmem>>, vector<1x8x128xf32>
    tpu.vector_store %arg6[%c0_21, %c0_22, %c0_23], %40 {strides = array<i32>} : memref<1x8x128xf32, #tpu.memory_space<vmem>>, vector<1x8x128xf32>,
    return
  }
  func.func @transform_0(%arg0: i32, %arg1: i32) -> (i32, i32) {
    %c1_i32 = arith.constant 1 : i32
    %0 = arith.muli %arg0, %c1_i32 : i32
    %1 = arith.addi %0, %arg1 : i32
    %c0_i32 = arith.constant 0 : i32
    %2 = arith.minsi %1, %c0_i32 : i32
    %c0_i32_0 = arith.constant 0 : i32
    %c0_i32_1 = arith.constant 0 : i32
    return %2, %c0_i32_0 : i32, i32
  }
  func.func @transform_1(%arg0: i32, %arg1: i32) -> (i32, i32) {
    %c1_i32 = arith.constant 1 : i32
    %0 = arith.muli %arg0, %c1_i32 : i32
    %1 = arith.addi %0, %arg1 : i32
    %c0_i32 = arith.constant 0 : i32
    %2 = arith.minsi %1, %c0_i32 : i32
    %c0_i32_0 = arith.constant 0 : i32
    %c0_i32_1 = arith.constant 0 : i32
    return %2, %c0_i32_0 : i32, i32
  }
  func.func @transform_2(%arg0: i32, %arg1: i32) -> (i32, i32) {
    %c1_i32 = arith.constant 1 : i32
    %0 = arith.muli %arg0, %c1_i32 : i32
    %1 = arith.addi %0, %arg1 : i32
    %c0_i32 = arith.constant 0 : i32
    %2 = arith.minsi %1, %c0_i32 : i32
    %c0_i32_0 = arith.constant 0 : i32
    %c0_i32_1 = arith.constant 0 : i32
    return %2, %c0_i32_0 : i32, i32
  }
  func.func @transform_3(%arg0: i32, %arg1: i32) -> (i32, i32, i32) {
    %c0_i32 = arith.constant 0 : i32
    %c0_i32_0 = arith.constant 0 : i32
    %c0_i32_1 = arith.constant 0 : i32
    return %arg0, %c0_i32, %c0_i32_0 : i32, i32, i32
  }
  func.func @transform_4(%arg0: i32, %arg1: i32) -> (i32, i32, i32) {
    %c0_i32 = arith.constant 0 : i32
    %c0_i32_0 = arith.constant 0 : i32
    %c0_i32_1 = arith.constant 0 : i32
    return %arg0, %c0_i32, %c0_i32_0 : i32, i32, i32
  }
}

</mosaic_0001>

<bundles_post_ra>
// kernel: offsets_loss.1
= control target key start
LH: loop header
LB: loop body
LE: loop exit
PB: predicated region body
PF: predicated region fallthrough
CT: control target
= control target key end

     0   :  { %v183_v9 = vmov 0.0   ;;  %s233_s0 = inlined_call_operand.vmem [shape: f32[16,128], index: 0, kind: input, shape index: {}]   ;;  %s234_s1 = inlined_call_operand.vmem [shape: f32[16,128], index: 1, kind: input, shape index: {}]   ;;  %s235_s2 = inlined_call_operand.vmem [shape: f32[16,128], index: 2, kind: input, shape index: {}]   ;;  %s236_s4 = inlined_call_operand.vmem [shape: f32[1,8,128], index: 4, kind: output, shape index: {1}]   ;;  %s237_s3 = inlined_call_operand.vmem [shape: f32[1,8,128], index: 3, kind: output, shape index: {0}]  }
   0x1   :  { %v118_v0 = vld [vmem:[%s233_s0] sm:$0xff]  ;;  %v119_v1 = vld [vmem:[%s233_s0 + $0x8] sm:$0xff] }
   0x2   :  { %v120_v2 = vld [vmem:[%s234_s1] sm:$0xff]  ;;  %v121_v3 = vld [vmem:[%s234_s1 + $0x8] sm:$0xff] }
   0x3   :  { %v122_v4 = vld [vmem:[%s235_s2] sm:$0xff]  ;;  %v123_v5 = vld [vmem:[%s235_s2 + $0x8] sm:$0xff]  ;;  %v124_v6 = vsub.f32 %v118_v0, %v120_v2  ;;  %v125_v7 = vsub.f32 %v119_v1, %v121_v3 }
   0x4   :  { %vm140_vm0 = vcmp.gt.f32.partialorder %v122_v4, 0.0  ;;  %vm141_vm1 = vcmp.gt.f32.partialorder %v123_v5, 0.0 }
   0x5   :  { %v126_v8 = vand.u32 2147483647, %v124_v6  ;;  %v142_v10 = vsel %vm140_vm0, 1.0, %v183_v9  ;;  %v143_v11 = vsel %vm141_vm1, 1.0, %v183_v9  ;;  %v127_v12 = vand.u32 2147483647, %v125_v7 }
   0x6   :  { %v146_v13 = vadd.f32 %v143_v11, %v142_v10 }
   0x7   :  { %v130_v14 = vmul.f32 4.5, %v126_v8  ;;  %v180_v15 = vadd.f32 -0.055555556, %v126_v8  ;;  %vm128_vm2 = vcmp.lt.f32.partialorder %v126_v8, 0.11111111  ;;  %v131_v16 = vmul.f32 4.5, %v127_v12 }
   0x8   :  { %v181_v17 = vadd.f32 -0.055555556, %v127_v12  ;;  %vm129_vm3 = vcmp.lt.f32.partialorder %v127_v12, 0.11111111  ;;  %153 = vst [vmem:[%s236_s4] sm:$0xff] %v146_v13 }
   0x9   :  { %v132_v18 = vmul.f32 %v130_v14, %v126_v8  ;;  %v133_v19 = vmul.f32 %v131_v16, %v127_v12 }
   0xb   :  { %v136_v20 = vsel %vm128_vm2, %v132_v18, %v180_v15  ;;  %v137_v21 = vsel %vm129_vm3, %v133_v19, %v181_v17 }
   0xc   :  { %v138_v22 = vmul.f32 %v136_v20, %v122_v4  ;;  %v139_v23 = vmul.f32 %v137_v21, %v123_v5 }
   0xe   :  { %v144_v24 = vadd.f32 %v139_v23, %v138_v22 }
  0x10   :  { %150 = vst [vmem:[%s237_s3] sm:$0xff] %v144_v24 }

</bundles_post_ra>
